<compile_context>
chip_gen: v7x
topology: tpu7x:2x2x1
jax: 0.10.0
libtpu: 0.0.40
codegen_flags: <defaults>
</compile_context>

<pallas_src>
import functools

import jax
import jax.numpy as jnp
from jax import lax
from jax.experimental import pallas as pl
from jax.experimental.pallas import tpu as pltpu


def spectral_norm_weight(weight, u, eps=1e-12):
    """torch.nn.utils.spectral_norm forward (1 power iteration) on a 2D weight."""
    # TODO(synk): PyTorch updates the power-iteration vector u in-place every
    # training forward; here u is a fixed input (eval-mode behavior).
    v = weight.T @ u
    v = v / (jnp.linalg.norm(v) + eps)
    u_new = weight @ v
    u_new = u_new / (jnp.linalg.norm(u_new) + eps)
    sigma = u_new @ (weight @ v)
    return weight / sigma


# ------------- fused single-slab kernel (full HW fits in one tile) -------------

def _adain_fused_kernel(gamma_ref, beta_ref, x_ref, o_ref, *, inv_hw, eps):
    # gamma_ref/beta_ref: (row_blk, 1)   x_ref/o_ref: (row_blk, HW_pad)
    x = x_ref[...].astype(jnp.float32)
    s = jnp.sum(x, axis=-1, keepdims=True)
    sq = jnp.sum(x * x, axis=-1, keepdims=True)
    mean = s * inv_hw
    var = jnp.maximum(sq * inv_hw - mean * mean, 0.0)
    scale = gamma_ref[...] * lax.rsqrt(var + eps)            # (row_blk, 1)
    shift = beta_ref[...] - mean * scale                     # (row_blk, 1)
    o_ref[...] = (x * scale + shift).astype(o_ref.dtype)


# ------------- two-pass path (HW slab too large for a single VMEM tile) --------

def _stats_kernel(x_ref, mean_ref, rstd_ref, *, inv_hw, eps):
    # Accumulate sum / sumsq directly into the resident output blocks across the
    # "arbitrary" HW grid axis; finalize to mean / rstd on the last HW step.
    h = pl.program_id(1)

    @pl.when(h == 0)
    def _():
        mean_ref[...] = jnp.zeros_like(mean_ref)
        rstd_ref[...] = jnp.zeros_like(rstd_ref)

    x = x_ref[...].astype(jnp.float32)
    mean_ref[...] += jnp.sum(x, axis=-1, keepdims=True)       # running sum
    rstd_ref[...] += jnp.sum(x * x, axis=-1, keepdims=True)   # running sumsq

    @pl.when(h == pl.num_programs(1) - 1)
    def _():
        mean = mean_ref[...] * inv_hw
        var = jnp.maximum(rstd_ref[...] * inv_hw - mean * mean, 0.0)
        mean_ref[...] = mean
        rstd_ref[...] = lax.rsqrt(var + eps)


def _normalize_kernel(gamma_ref, beta_ref, mean_ref, rstd_ref, x_ref, o_ref):
    scale = gamma_ref[...] * rstd_ref[...]                    # (row_blk, 1)
    shift = beta_ref[...] - mean_ref[...] * scale             # (row_blk, 1)
    x = x_ref[...].astype(jnp.float32)
    o_ref[...] = (x * scale + shift).astype(o_ref.dtype)


# ------------------------------- wrapper ---------------------------------------

def _round_up(a, b):
    return (a + b - 1) // b * b


def _row_multiple(dtype):
    itemsize = jnp.dtype(dtype).itemsize
    if itemsize >= 4:
        return 8
    if itemsize == 2:
        return 16
    return 32


def _pad2d(a, rows_pad, cols_pad):
    r, c = a.shape
    if rows_pad == r and cols_pad == c:
        return a
    return jnp.pad(a, ((0, rows_pad - r), (0, cols_pad - c)))


def adaptive_instance_norm(x_nchw, style, weight, bias, u, *, eps=1e-5,
                           tile_budget_bytes=4 * 1024 * 1024):
    """AdaptiveInstanceNorm.forward with a Pallas TPU hot path."""
    N, C, H, W = x_nchw.shape
    HW = H * W
    dtype = x_nchw.dtype
    itemsize = jnp.dtype(dtype).itemsize
    rows = N * C

    # ---- style projection (plain JAX): spectral norm + EqualLinear; far too
    # small for the MXU / kernel, gamma & beta become per-row scalars. ----
    w_sn = spectral_norm_weight(weight, u)                    # (2C, style_dim)
    s_out = style @ w_sn.T + bias                             # (N, 2C)
    gamma = s_out[:, :C].reshape(rows, 1).astype(jnp.float32)
    beta = s_out[:, C:].reshape(rows, 1).astype(jnp.float32)

    x_rows = x_nchw.reshape(rows, HW)                         # NCHW -> spatial on lanes

    rm = _row_multiple(dtype)
    hw_pad = _round_up(HW, 128)                               # lane-dense stores
    rows_min = _round_up(rows, rm)
    inv_hw = 1.0 / HW                                         # real HW (zero-padding exact)
    vmem_limit = 32 * 1024 * 1024                             # safe on v7x (64 MiB physical)

    if rm * hw_pad * itemsize <= tile_budget_bytes:
        # ---------- fused path: one (row_blk x full-HW) slab per grid step ----------
        cap = max(rm, (tile_budget_bytes // (hw_pad * itemsize)) // rm * rm)
        row_blk = min(cap, rows_min)
        rows_pad = _round_up(rows, row_blk)

        xp = _pad2d(x_rows, rows_pad, hw_pad)
        gp = _pad2d(gamma, rows_pad, 1)
        bp = _pad2d(beta, rows_pad, 1)

        kernel = functools.partial(_adain_fused_kernel, inv_hw=inv_hw, eps=eps)
        y = pl.pallas_call(
            kernel,
            out_shape=jax.ShapeDtypeStruct((rows_pad, hw_pad), dtype),
            grid_spec=pltpu.PrefetchScalarGridSpec(
                num_scalar_prefetch=0,
                grid=(rows_pad // row_blk,),
                in_specs=[
                    pl.BlockSpec((row_blk, 1), lambda r: (r, 0)),
                    pl.BlockSpec((row_blk, 1), lambda r: (r, 0)),
                    pl.BlockSpec((row_blk, hw_pad), lambda r: (r, 0)),
                ],
                out_specs=pl.BlockSpec((row_blk, hw_pad), lambda r: (r, 0)),
            ),
            compiler_params=pltpu.CompilerParams(
                dimension_semantics=("parallel",),
                vmem_limit_bytes=vmem_limit,
            ),
        )(gp, bp, xp)
    else:
        # ---------- large-HW path: stats pass (arbitrary HW axis) + normalize pass ----------
        row_blk = min(rows_min, 8 * rm)
        hw_blk = max(128, (tile_budget_bytes // (row_blk * itemsize)) // 128 * 128)
        hw_blk = min(hw_blk, hw_pad)
        hw_pad2 = _round_up(HW, hw_blk)
        rows_pad = _round_up(rows, row_blk)
        grid = (rows_pad // row_blk, hw_pad2 // hw_blk)

        xp = _pad2d(x_rows, rows_pad, hw_pad2)
        gp = _pad2d(gamma, rows_pad, 1)
        bp = _pad2d(beta, rows_pad, 1)

        mean, rstd = pl.pallas_call(
            functools.partial(_stats_kernel, inv_hw=inv_hw, eps=eps),
            out_shape=(jax.ShapeDtypeStruct((rows_pad, 1), jnp.float32),
                       jax.ShapeDtypeStruct((rows_pad, 1), jnp.float32)),
            grid_spec=pltpu.PrefetchScalarGridSpec(
                num_scalar_prefetch=0,
                grid=grid,
                in_specs=[pl.BlockSpec((row_blk, hw_blk), lambda r, h: (r, h))],
                out_specs=[pl.BlockSpec((row_blk, 1), lambda r, h: (r, 0)),
                           pl.BlockSpec((row_blk, 1), lambda r, h: (r, 0))],
            ),
            compiler_params=pltpu.CompilerParams(
                dimension_semantics=("parallel", "arbitrary"),
                vmem_limit_bytes=vmem_limit,
            ),
        )(xp)

        y = pl.pallas_call(
            _normalize_kernel,
            out_shape=jax.ShapeDtypeStruct((rows_pad, hw_pad2), dtype),
            grid_spec=pltpu.PrefetchScalarGridSpec(
                num_scalar_prefetch=0,
                grid=grid,
                in_specs=[
                    pl.BlockSpec((row_blk, 1), lambda r, h: (r, 0)),
                    pl.BlockSpec((row_blk, 1), lambda r, h: (r, 0)),
                    pl.BlockSpec((row_blk, 1), lambda r, h: (r, 0)),
                    pl.BlockSpec((row_blk, 1), lambda r, h: (r, 0)),
                    pl.BlockSpec((row_blk, hw_blk), lambda r, h: (r, h)),
                ],
                out_specs=pl.BlockSpec((row_blk, hw_blk), lambda r, h: (r, h)),
            ),
            compiler_params=pltpu.CompilerParams(
                dimension_semantics=("parallel", "parallel"),
                vmem_limit_bytes=vmem_limit,
            ),
        )(gp, bp, mean, rstd, xp)

    y = y[:rows, :HW]
    return y.reshape(N, C, H, W)


if __name__ == "__main__":
    key = jax.random.PRNGKey(0)
    kx, ks, kw, ku = jax.random.split(key, 4)

    # AdaptiveInstanceNorm(in_channel=4, style_dim=8)
    N, C, H, W = 2, 4, 16, 16
    style_dim = 8

    x = jax.random.normal(kx, (N, C, H, W), jnp.float32)
    style = jax.random.normal(ks, (N, style_dim), jnp.float32)

    # EqualLinear init: weight ~ N(0, 0.02); AdaIN sets bias[:C] = 1, bias[C:] = 0
    weight = 0.02 * jax.random.normal(kw, (2 * C, style_dim), jnp.float32)
    bias = jnp.concatenate([jnp.ones((C,), jnp.float32),
                            jnp.zeros((C,), jnp.float32)])
    u = jax.random.normal(ku, (2 * C,), jnp.float32)
    u = u / (jnp.linalg.norm(u) + 1e-12)

    # reference (plain JAX, same spectral-normalized weight)
    w_sn = spectral_norm_weight(weight, u)
    s_out = style @ w_sn.T + bias                     # (N, 2C)
    gamma_r = s_out[:, :C][:, :, None, None]
    beta_r = s_out[:, C:][:, :, None, None]
    mean_r = x.mean(axis=(2, 3), keepdims=True)
    var_r = x.var(axis=(2, 3), keepdims=True)         # biased, matches InstanceNorm2d
    y_ref = gamma_r * (x - mean_r) / jnp.sqrt(var_r + 1e-5) + beta_r

    # 1) fused single-slab path (default budget)
    y = jax.block_until_ready(adaptive_instance_norm(x, style, weight, bias, u))
    assert y.shape == (N, C, H, W)
    assert jnp.allclose(y, y_ref, atol=1e-4, rtol=1e-4), "fused path mismatch vs JAX reference"

    # 2) force the large-feature-map two-pass path with a tiny tile budget to exercise it
    y2 = jax.block_until_ready(
        adaptive_instance_norm(x, style, weight, bias, u, tile_budget_bytes=4096))
    assert jnp.allclose(y2, y_ref, atol=1e-4, rtol=1e-4), "two-pass path mismatch vs JAX reference"

    print("KERNEL_OK")
</pallas_src>

<mosaic_0001>
module attributes {stable_mosaic.version = 11 : i64} {
  func.func @_adain_fused_kernel(%arg0: i32, %arg1: memref<8x1xf32, #tpu.memory_space<vmem>>, %arg2: memref<8x1xf32, #tpu.memory_space<vmem>>, %arg3: memref<8x256xf32, #tpu.memory_space<vmem>>, %arg4: memref<8x256xf32, #tpu.memory_space<vmem>>) attributes {dimension_semantics = [#tpu.dimension_semantics<parallel>], iteration_bounds = array<i64: 1>, scalar_prefetch = 0 : i64, scratch_operands = 0 : i64, tpu.core_type = #tpu.core_type<tc>, window_params = [{transform_indices = @transform_0, window_bounds = array<i64: 8, 1>}, {transform_indices = @transform_1, window_bounds = array<i64: 8, 1>}, {transform_indices = @transform_2, window_bounds = array<i64: 8, 256>}, {transform_indices = @transform_3, window_bounds = array<i64: 8, 256>}]} {
    %c0 = arith.constant 0 : index
    %c0_0 = arith.constant 0 : index
    %0 = vector.load %arg3[%c0, %c0_0] : memref<8x256xf32, #tpu.memory_space<vmem>>, vector<8x256xf32>
    %cst = arith.constant dense<0.000000e+00> : vector<8xf32>
    %1 = vector.multi_reduction <add>, %0, %cst [1] : vector<8x256xf32> to vector<8xf32>
    %2 = vector.shape_cast %1 : vector<8xf32> to vector<8x1xf32>
    %3 = arith.mulf %0, %0 : vector<8x256xf32>
    %cst_1 = arith.constant dense<0.000000e+00> : vector<8xf32>
    %4 = vector.multi_reduction <add>, %3, %cst_1 [1] : vector<8x256xf32> to vector<8xf32>
    %5 = vector.shape_cast %4 : vector<8xf32> to vector<8x1xf32>
    %cst_2 = arith.constant 3.906250e-03 : f32
    %6 = vector.broadcast %cst_2 : f32 to vector<8x1xf32>
    %7 = arith.mulf %2, %6 : vector<8x1xf32>
    %cst_3 = arith.constant 3.906250e-03 : f32
    %8 = vector.broadcast %cst_3 : f32 to vector<8x1xf32>
    %9 = arith.mulf %5, %8 : vector<8x1xf32>
    %10 = arith.mulf %7, %7 : vector<8x1xf32>
    %11 = arith.subf %9, %10 : vector<8x1xf32>
    %cst_4 = arith.constant 0.000000e+00 : f32
    %12 = vector.broadcast %cst_4 : f32 to vector<8x1xf32>
    %13 = arith.maximumf %11, %12 : vector<8x1xf32>
    %c0_5 = arith.constant 0 : index
    %c0_6 = arith.constant 0 : index
    %14 = vector.load %arg1[%c0_5, %c0_6] : memref<8x1xf32, #tpu.memory_space<vmem>>, vector<8x1xf32>
    %cst_7 = arith.constant 9.99999974E-6 : f32
    %15 = vector.broadcast %cst_7 : f32 to vector<8x1xf32>
    %16 = arith.addf %13, %15 : vector<8x1xf32>
    %17 = math.rsqrt %16 : vector<8x1xf32>
    %18 = arith.mulf %14, %17 : vector<8x1xf32>
    %c0_8 = arith.constant 0 : index
    %c0_9 = arith.constant 0 : index
    %19 = vector.load %arg2[%c0_8, %c0_9] : memref<8x1xf32, #tpu.memory_space<vmem>>, vector<8x1xf32>
    %20 = arith.mulf %7, %18 : vector<8x1xf32>
    %21 = arith.subf %19, %20 : vector<8x1xf32>
    %22 = vector.broadcast %18 : vector<8x1xf32> to vector<8x256xf32>
    %23 = arith.mulf %0, %22 : vector<8x256xf32>
    %24 = vector.broadcast %21 : vector<8x1xf32> to vector<8x256xf32>
    %25 = arith.addf %23, %24 : vector<8x256xf32>
    %c0_10 = arith.constant 0 : index
    %c0_11 = arith.constant 0 : index
    %26 = vector.load %arg4[%c0_10, %c0_11] : memref<8x256xf32, #tpu.memory_space<vmem>>, vector<8x256xf32>
    tpu.vector_store %arg4[%c0_10, %c0_11], %25 {strides = array<i32>} : memref<8x256xf32, #tpu.memory_space<vmem>>, vector<8x256xf32>,
    return
  }
  func.func @transform_0(%arg0: i32) -> (i32, i32) {
    %c0_i32 = arith.constant 0 : i32
    %c0_i32_0 = arith.constant 0 : i32
    return %arg0, %c0_i32 : i32, i32
  }
  func.func @transform_1(%arg0: i32) -> (i32, i32) {
    %c0_i32 = arith.constant 0 : i32
    %c0_i32_0 = arith.constant 0 : i32
    return %arg0, %c0_i32 : i32, i32
  }
  func.func @transform_2(%arg0: i32) -> (i32, i32) {
    %c0_i32 = arith.constant 0 : i32
    %c0_i32_0 = arith.constant 0 : i32
    return %arg0, %c0_i32 : i32, i32
  }
  func.func @transform_3(%arg0: i32) -> (i32, i32) {
    %c0_i32 = arith.constant 0 : i32
    %c0_i32_0 = arith.constant 0 : i32
    return %arg0, %c0_i32 : i32, i32
  }
}

</mosaic_0001>

<bundles_post_ra>
// kernel: tpu_custom_call.1
= control target key start
LH: loop header
LB: loop body
LE: loop exit
PB: predicated region body
PF: predicated region fallthrough
CT: control target
= control target key end

     0   :  { %s143_s0 = inlined_call_operand.vmem [shape: f32[8,1], index: 0, kind: input, shape index: {}]   ;;  %s144_s1 = inlined_call_operand.vmem [shape: f32[8,1], index: 1, kind: input, shape index: {}]   ;;  %s145_s2 = inlined_call_operand.vmem [shape: f32[8,256], index: 2, kind: input, shape index: {}]   ;;  %s146_s3 = inlined_call_operand.hbm [shape: f32[8,256], index: 3, kind: output, shape index: {}]  }
   0x1   :  { %v15_v0 = vld [vmem:[%s145_s2] sm:$0xff]  ;;  %v16_v1 = vld [vmem:[%s145_s2 + $0x8] sm:$0xff] }
   0x2   :  { %8 = vsyncpa [#allocation3], 0  ;;  %v17_v2 = vadd.f32 %v16_v1, %v15_v0  ;;  %v20_v3 = vmul.f32 %v15_v0, %v15_v0  ;;  %v21_v4 = vmul.f32 %v16_v1, %v16_v1  ;;  %v97_v6 = vmov 0   ;;  %v30_v15 = vld [vmem:[%s143_s0] sm:$0xff]  ;;  %s98_s19 = smov [#allocation2]  }
   0x3   :  { %69 = vset.pattern.permute.xlu1 %v97_v6  ;;  %70 = vset.pattern.permute.xlu0 %v97_v6  ;;  %v34_v18 = vld [vmem:[%s144_s1] sm:$0xff]  ;;  %s59_s20 = sshll.u32 %s98_s19, 4  ;;  %s60_s20 = int_to_ptr.vmem [resolvable:$true] %s59_s20 }
   0x4   :  { %18 = vadd.xlane.f32.xlu0 %v17_v2  ;;  %v22_v5 = vadd.f32 %v21_v4, %v20_v3  ;;  %s73_s0 = scalar_lea.vmem %s60_s20, 256  ;;  %p78_p1 = scmp.lt.s32.totalorder %s60_s20, %s60_s20 }
   0x5   :  { %p74_p0 = scmp.ne.s32.totalorder %s60_s20, %s73_s0  ;;  %p79_p2 = scmp.lt.s32.totalorder %s73_s0, %s73_s0 }
   0x7   :  { %p80_p3 = por %p79_p2, %p78_p1 }
   0x8   :  { %23 = vadd.xlane.f32.xlu0 %v22_v5 }
   0x9   :  { %p81_p4 = pnand %p80_p3, %p74_p0 }
  0x91   :  { %v19_v7 = vpop.xlane.xlu0 %18 }
  0x92   :  { %v25_v8 = vmul.f32 0.00390625, %v19_v7 }
  0x94   :  { %v27_v10 = vmul.f32 %v25_v8, %v25_v8 }
  0x95   :  { %v24_v9 = vpop.xlane.xlu0 %23 }
  0x96   :  { %v26_v11 = vmul.f32 0.00390625, %v24_v9 }
  0x98   :  { %v28_v12 = vsub.f32 %v26_v11, %v27_v10 }
  0x9a   :  { %v29_v13 = vmax.f32 %v28_v12, 0.0 }
  0x9c   :  { %v31_v14 = vadd.f32 1e-05, %v29_v13 }
  0x9e   :  { %71 = vrsqrt.f32 %v31_v14 }
  0xa8   :  { %v72_v16 = vpop.eup %71 }
  0xa9   :  { %v33_v17 = vmul.f32 %v72_v16, %v30_v15 }
  0xab   :  { %39 = vperm.xlu1 %69, %v33_v17   ;;  %v35_v19 = vmul.f32 %v33_v17, %v25_v8 }
  0xad   :  { %v36_v20 = vsub.f32 %v34_v18, %v35_v19 }
  0xaf   :  { %46 = vperm.xlu1 %69, %v36_v20  }
 0x12a   :  { %v40_v21 = vpop.permute.xlu1 %39 }
 0x12b   :  { %v42_v22 = vmul.f32 %v40_v21, %v15_v0  ;;  %v43_v23 = vmul.f32 %v40_v21, %v16_v1 }
 0x12e   :  { %v47_v24 = vpop.permute.xlu1 %46 }
 0x12f   :  { %v49_v25 = vadd.f32 %v47_v24, %v42_v22  ;;  %v50_v26 = vadd.f32 %v47_v24, %v43_v23 }
 0x131   :  { %51 = vst [vmem:[#allocation2] sm:$0xff] %v49_v25  ;;  %52 = vst [vmem:[#allocation2 + $0x8] sm:$0xff] %v50_v26 }
 0x132   :  { %84 = shalt.err (!%p81_p4)
}
 0x133   :  { %s85_s22 = scalar_lea.hbm %s146_s3, 256 }
 0x134   :  { %p86_p5 = scmp.ne.s32.totalorder %s146_s3, %s85_s22  ;;  %p89_p6 = scmp.lt.u32.totalorder %s85_s22, %s146_s3 }
 0x136   :  { %p91_p7 = pnand %p89_p6, %p86_p5 }
 0x138   :  { %94 = shalt.err (!%p91_p7)
}
 0x139   :  { %62 = dma.vmem_to_hbm [thread:$0]  %s60_s20, 256, %s146_s3, [#allocation3]  }
 0x13a   :  { %95 = dma.done.wait [#allocation3], 256  }
 0x13b   :  { %96 = vsyncadd [#allocation3], 4294967040 }
 0x13c   :  { %66 = vsyncpa [#allocation3], 1 }

</bundles_post_ra>
